<compile_context>
chip_gen: v5e
topology: v5e:2x2
jax: 0.10.0
libtpu: 0.0.40
codegen_flags: <defaults>
</compile_context>

<pallas_src>
import jax
import jax.numpy as jnp
from jax.experimental import pallas as pl
from jax.experimental.pallas import tpu as pltpu


def _binrot_kernel(x_ref, out_ref, acc_ref):
    """x_ref: (16, N_pad) f32 packed slab, out_ref: (8, 1) f32 partial sums,
    acc_ref: (8, N_pad) f32 VMEM scratch used to fuse all lane reductions."""
    # Direct row loads off the ref (static slices -> cheap sublane-offset loads;
    # avoids slicing a materialized (16, N) value).
    p0 = x_ref[0:1, :]
    p1 = x_ref[1:2, :]
    p2 = x_ref[2:3, :]
    p3 = x_ref[3:4, :]
    p4 = x_ref[4:5, :]
    p5 = x_ref[5:6, :]
    p6 = x_ref[6:7, :]
    p7 = x_ref[7:8, :]
    sin1 = x_ref[8:9, :]
    sin2 = x_ref[9:10, :]
    cos1 = x_ref[10:11, :]
    cos2 = x_ref[11:12, :]
    m = x_ref[12:13, :]       # mask (0/1)
    rv = x_ref[13:14, :]      # row-valid (0 for padded columns, 1 otherwise)
    t1 = x_ref[14:15, :]      # rotbin[:, 0] as f32 (values in {0, 1})
    t2 = x_ref[15:16, :]      # rotbin[:, 1] as f32

    def softplus(d):
        # stable softplus(d) = max(d, 0) + log(1 + exp(-|d|)) : 1 exp + 1 log
        return jnp.maximum(d, 0.0) + jnp.log(1.0 + jnp.exp(-jnp.abs(d)))

    def smooth_l1(d):
        ad = jnp.abs(d)
        return jnp.where(ad < 1.0, 0.5 * ad * ad, ad - 0.5)

    # 2-class CE on masked logits: lse(z0, z1) - z_t == softplus((1-2t)*(z1-z0)),
    # with z = mask * pred  (mask==0 rows contribute log(2), matching PyTorch's
    # F.cross_entropy(pred * mask, target)).  rv zeroes the padded columns.
    ce1 = rv * softplus((1.0 - 2.0 * t1) * (m * (p1 - p0)))
    ce2 = rv * softplus((1.0 - 2.0 * t2) * (m * (p5 - p4)))

    # Residual terms are averaged over rows whose bin target != 0 (padded
    # columns have tbin == 0, so they drop out automatically).
    v1 = (t1 != 0.0).astype(jnp.float32)
    v2 = (t2 != 0.0).astype(jnp.float32)

    # Pack the 8 per-column partial terms into one (8, N_pad) block and do a
    # single lane reduction (one packed XLU pass instead of 8 sparse ones).
    acc_ref[0:1, :] = ce1
    acc_ref[1:2, :] = ce2
    acc_ref[2:3, :] = v1 * smooth_l1(p2 - sin1)
    acc_ref[3:4, :] = v1 * smooth_l1(p3 - cos1)
    acc_ref[4:5, :] = v1
    acc_ref[5:6, :] = v2 * smooth_l1(p6 - sin2)
    acc_ref[6:7, :] = v2 * smooth_l1(p7 - cos2)
    acc_ref[7:8, :] = v2

    out_ref[...] = jnp.sum(acc_ref[...], axis=-1, keepdims=True)   # (8, 1)


@jax.jit
def binrot_loss_pallas(output, mask, ind, rotbin, rotres):
    """output: (B, 8, H, W) f32, mask: (B, K) numeric/bool, ind: (B, K) int,
    rotbin: (B, K, 2) int (bin ids in {0,1}), rotres: (B, K, 2) f32
    -> scalar f32 loss."""
    B, C, H, W = output.shape
    K = ind.shape[1]
    N = B * K
    HW = H * W
    n_pad = ((N + 127) // 128) * 128   # full-lane columns

    # ---- wrapper glue (fuses under jit): gather only the K needed rows ----
    feat = output.reshape(B, C, HW).astype(jnp.float32)                 # no full-map transpose
    ind32 = ind.astype(jnp.int32)
    gathered = jnp.take_along_axis(feat, ind32[:, None, :], axis=2)     # (B, C, K)
    # channel-major, lane-dense layout: column n = b*K + k  (matches .view(-1, 8))
    pred_t = jnp.transpose(gathered, (1, 0, 2)).reshape(C, N)           # (8, N)

    res_t = jnp.transpose(rotres.astype(jnp.float32), (2, 0, 1)).reshape(2, N)  # (2, N)
    tbin_t = jnp.transpose(rotbin, (2, 0, 1)).reshape(2, N).astype(jnp.float32)  # (2, N)
    sin_t = jnp.sin(res_t)
    cos_t = jnp.cos(res_t)
    mask_t = mask.astype(jnp.float32).reshape(1, N)                     # (1, N)
    valid_t = jnp.ones((1, N), jnp.float32)                             # real-column marker

    # One lane-dense slab, one input DMA.  Row layout must match the kernel.
    slab = jnp.concatenate([pred_t, sin_t, cos_t, mask_t, valid_t, tbin_t], axis=0)  # (16, N)
    slab = jnp.pad(slab, ((0, 0), (0, n_pad - N)))                                   # (16, n_pad)

    sums = pl.pallas_call(
        _binrot_kernel,
        out_shape=jax.ShapeDtypeStruct((8, 1), jnp.float32),
        scratch_shapes=[pltpu.VMEM((8, n_pad), jnp.float32)],
    )(slab)

    # Tiny scalar finalize (fuses into the surrounding jit).
    s = sums[:, 0]
    n_f = jnp.float32(N)
    loss_bin = (s[0] + s[1]) / n_f
    res1 = jnp.where(s[4] > 0.0, (s[2] + s[3]) / jnp.maximum(s[4], 1.0), 0.0)
    res2 = jnp.where(s[7] > 0.0, (s[5] + s[6]) / jnp.maximum(s[7], 1.0), 0.0)
    return loss_bin + res1 + res2


def binrot_loss_reference(output, mask, ind, rotbin, rotres):
    """Pure-JAX reference for correctness checking (mirrors the PyTorch code)."""
    B, C, H, W = output.shape
    K = ind.shape[1]
    feat = jnp.transpose(output, (0, 2, 3, 1)).reshape(B, H * W, C).astype(jnp.float32)
    idx = jnp.broadcast_to(ind.astype(jnp.int32)[:, :, None], (B, K, C))
    pred = jnp.take_along_axis(feat, idx, axis=1).reshape(-1, 8)
    tbin = rotbin.reshape(-1, 2).astype(jnp.int32)
    tres = rotres.reshape(-1, 2).astype(jnp.float32)
    m = mask.reshape(-1, 1).astype(jnp.float32)

    def ce(logits, tgt):
        logits = logits * m
        lse = jax.nn.logsumexp(logits, axis=1)
        zt = jnp.take_along_axis(logits, tgt[:, None], axis=1)[:, 0]
        return jnp.mean(lse - zt)

    loss_bin1 = ce(pred[:, 0:2], tbin[:, 0])
    loss_bin2 = ce(pred[:, 4:6], tbin[:, 1])

    def sl1(x):
        ax = jnp.abs(x)
        return jnp.where(ax < 1.0, 0.5 * ax * ax, ax - 0.5)

    def res(valid, p_sin, p_cos, ang):
        cnt = jnp.sum(valid)
        s = jnp.sum(valid * sl1(p_sin - jnp.sin(ang)))
        c = jnp.sum(valid * sl1(p_cos - jnp.cos(ang)))
        return jnp.where(cnt > 0, (s + c) / jnp.maximum(cnt, 1.0), 0.0)

    v1 = (tbin[:, 0] != 0).astype(jnp.float32)
    v2 = (tbin[:, 1] != 0).astype(jnp.float32)
    loss_res = (res(v1, pred[:, 2], pred[:, 3], tres[:, 0])
                + res(v2, pred[:, 6], pred[:, 7], tres[:, 1]))
    return loss_bin1 + loss_bin2 + loss_res


if __name__ == "__main__":
    B, C, H, W, K = 2, 8, 16, 16, 8   # rotation head has 8 channels
    key = jax.random.PRNGKey(0)
    k1, k2, k3, k4, k5 = jax.random.split(key, 5)

    output = jax.random.normal(k1, (B, C, H, W), dtype=jnp.float32)
    ind = jax.random.randint(k2, (B, K), 0, H * W, dtype=jnp.int32)
    rotbin = jax.random.randint(k3, (B, K, 2), 0, 2, dtype=jnp.int32)
    rotres = jax.random.uniform(k4, (B, K, 2), minval=-3.14, maxval=3.14,
                                dtype=jnp.float32)
    mask = jax.random.bernoulli(k5, 0.7, (B, K))  # bool, .float() in wrapper

    loss = binrot_loss_pallas(output, mask, ind, rotbin, rotres)
    loss = jax.block_until_ready(loss)

    ref = binrot_loss_reference(output, mask, ind, rotbin, rotres)
    assert jnp.allclose(loss, ref, atol=1e-5, rtol=1e-5), (loss, ref)

    print("KERNEL_OK")
</pallas_src>

<mosaic_0001>
module attributes {stable_mosaic.version = 11 : i64} {
  func.func @_binrot_kernel(%arg0: memref<16x128xf32, #tpu.memory_space<vmem>>, %arg1: memref<8x1xf32, #tpu.memory_space<vmem>>, %arg2: memref<8x128xf32, #tpu.memory_space<vmem>>) attributes {dimension_semantics = [], scalar_prefetch = 0 : i64, scratch_operands = 1 : i64, tpu.core_type = #tpu.core_type<tc>} {
    %c0 = arith.constant 0 : index
    %c0_0 = arith.constant 0 : index
    %0 = vector.load %arg0[%c0, %c0_0] : memref<16x128xf32, #tpu.memory_space<vmem>>, vector<1x128xf32>
    %c1 = arith.constant 1 : index
    %c0_1 = arith.constant 0 : index
    %1 = vector.load %arg0[%c1, %c0_1] : memref<16x128xf32, #tpu.memory_space<vmem>>, vector<1x128xf32>
    %c2 = arith.constant 2 : index
    %c0_2 = arith.constant 0 : index
    %2 = vector.load %arg0[%c2, %c0_2] : memref<16x128xf32, #tpu.memory_space<vmem>>, vector<1x128xf32>
    %c3 = arith.constant 3 : index
    %c0_3 = arith.constant 0 : index
    %3 = vector.load %arg0[%c3, %c0_3] : memref<16x128xf32, #tpu.memory_space<vmem>>, vector<1x128xf32>
    %c4 = arith.constant 4 : index
    %c0_4 = arith.constant 0 : index
    %4 = vector.load %arg0[%c4, %c0_4] : memref<16x128xf32, #tpu.memory_space<vmem>>, vector<1x128xf32>
    %c5 = arith.constant 5 : index
    %c0_5 = arith.constant 0 : index
    %5 = vector.load %arg0[%c5, %c0_5] : memref<16x128xf32, #tpu.memory_space<vmem>>, vector<1x128xf32>
    %c6 = arith.constant 6 : index
    %c0_6 = arith.constant 0 : index
    %6 = vector.load %arg0[%c6, %c0_6] : memref<16x128xf32, #tpu.memory_space<vmem>>, vector<1x128xf32>
    %c7 = arith.constant 7 : index
    %c0_7 = arith.constant 0 : index
    %7 = vector.load %arg0[%c7, %c0_7] : memref<16x128xf32, #tpu.memory_space<vmem>>, vector<1x128xf32>
    %c8 = arith.constant 8 : index
    %c0_8 = arith.constant 0 : index
    %8 = vector.load %arg0[%c8, %c0_8] : memref<16x128xf32, #tpu.memory_space<vmem>>, vector<1x128xf32>
    %c9 = arith.constant 9 : index
    %c0_9 = arith.constant 0 : index
    %9 = vector.load %arg0[%c9, %c0_9] : memref<16x128xf32, #tpu.memory_space<vmem>>, vector<1x128xf32>
    %c10 = arith.constant 10 : index
    %c0_10 = arith.constant 0 : index
    %10 = vector.load %arg0[%c10, %c0_10] : memref<16x128xf32, #tpu.memory_space<vmem>>, vector<1x128xf32>
    %c11 = arith.constant 11 : index
    %c0_11 = arith.constant 0 : index
    %11 = vector.load %arg0[%c11, %c0_11] : memref<16x128xf32, #tpu.memory_space<vmem>>, vector<1x128xf32>
    %c12 = arith.constant 12 : index
    %c0_12 = arith.constant 0 : index
    %12 = vector.load %arg0[%c12, %c0_12] : memref<16x128xf32, #tpu.memory_space<vmem>>, vector<1x128xf32>
    %c13 = arith.constant 13 : index
    %c0_13 = arith.constant 0 : index
    %13 = vector.load %arg0[%c13, %c0_13] : memref<16x128xf32, #tpu.memory_space<vmem>>, vector<1x128xf32>
    %c14 = arith.constant 14 : index
    %c0_14 = arith.constant 0 : index
    %14 = vector.load %arg0[%c14, %c0_14] : memref<16x128xf32, #tpu.memory_space<vmem>>, vector<1x128xf32>
    %c15 = arith.constant 15 : index
    %c0_15 = arith.constant 0 : index
    %15 = vector.load %arg0[%c15, %c0_15] : memref<16x128xf32, #tpu.memory_space<vmem>>, vector<1x128xf32>
    %cst = arith.constant 2.000000e+00 : f32
    %16 = vector.broadcast %cst : f32 to vector<1x128xf32>
    %17 = arith.mulf %16, %14 : vector<1x128xf32>
    %cst_16 = arith.constant 1.000000e+00 : f32
    %18 = vector.broadcast %cst_16 : f32 to vector<1x128xf32>
    %19 = arith.subf %18, %17 : vector<1x128xf32>
    %20 = arith.subf %1, %0 : vector<1x128xf32>
    %21 = arith.mulf %12, %20 : vector<1x128xf32>
    %22 = arith.mulf %19, %21 : vector<1x128xf32>
    %cst_17 = arith.constant 0.000000e+00 : f32
    %23 = vector.broadcast %cst_17 : f32 to vector<1x128xf32>
    %24 = arith.maximumf %22, %23 : vector<1x128xf32>
    %25 = math.absf %22 : vector<1x128xf32>
    %cst_18 = arith.constant 0.000000e+00 : f32
    %26 = vector.broadcast %cst_18 : f32 to vector<1x128xf32>
    %27 = arith.subf %26, %25 : vector<1x128xf32>
    %28 = math.exp %27 : vector<1x128xf32>
    %cst_19 = arith.constant 1.000000e+00 : f32
    %29 = vector.broadcast %cst_19 : f32 to vector<1x128xf32>
    %30 = arith.addf %29, %28 : vector<1x128xf32>
    %31 = math.log %30 : vector<1x128xf32>
    %32 = arith.addf %24, %31 : vector<1x128xf32>
    %33 = arith.mulf %13, %32 : vector<1x128xf32>
    %cst_20 = arith.constant 2.000000e+00 : f32
    %34 = vector.broadcast %cst_20 : f32 to vector<1x128xf32>
    %35 = arith.mulf %34, %15 : vector<1x128xf32>
    %cst_21 = arith.constant 1.000000e+00 : f32
    %36 = vector.broadcast %cst_21 : f32 to vector<1x128xf32>
    %37 = arith.subf %36, %35 : vector<1x128xf32>
    %38 = arith.subf %5, %4 : vector<1x128xf32>
    %39 = arith.mulf %12, %38 : vector<1x128xf32>
    %40 = arith.mulf %37, %39 : vector<1x128xf32>
    %cst_22 = arith.constant 0.000000e+00 : f32
    %41 = vector.broadcast %cst_22 : f32 to vector<1x128xf32>
    %42 = arith.maximumf %40, %41 : vector<1x128xf32>
    %43 = math.absf %40 : vector<1x128xf32>
    %cst_23 = arith.constant 0.000000e+00 : f32
    %44 = vector.broadcast %cst_23 : f32 to vector<1x128xf32>
    %45 = arith.subf %44, %43 : vector<1x128xf32>
    %46 = math.exp %45 : vector<1x128xf32>
    %cst_24 = arith.constant 1.000000e+00 : f32
    %47 = vector.broadcast %cst_24 : f32 to vector<1x128xf32>
    %48 = arith.addf %47, %46 : vector<1x128xf32>
    %49 = math.log %48 : vector<1x128xf32>
    %50 = arith.addf %42, %49 : vector<1x128xf32>
    %51 = arith.mulf %13, %50 : vector<1x128xf32>
    %cst_25 = arith.constant 0.000000e+00 : f32
    %52 = vector.broadcast %cst_25 : f32 to vector<1x128xf32>
    %53 = arith.cmpf one, %14, %52 : vector<1x128xf32>
    %54 = arith.extui %53 : vector<1x128xi1> to vector<1x128xi32>
    %55 = arith.sitofp %54 : vector<1x128xi32> to vector<1x128xf32>
    %cst_26 = arith.constant 0.000000e+00 : f32
    %56 = vector.broadcast %cst_26 : f32 to vector<1x128xf32>
    %57 = arith.cmpf one, %15, %56 : vector<1x128xf32>
    %58 = arith.extui %57 : vector<1x128xi1> to vector<1x128xi32>
    %59 = arith.sitofp %58 : vector<1x128xi32> to vector<1x128xf32>
    %c0_27 = arith.constant 0 : index
    %c0_28 = arith.constant 0 : index
    %60 = vector.load %arg2[%c0_27, %c0_28] : memref<8x128xf32, #tpu.memory_space<vmem>>, vector<1x128xf32>
    tpu.vector_store %arg2[%c0_27, %c0_28], %33 {strides = array<i32>} : memref<8x128xf32, #tpu.memory_space<vmem>>, vector<1x128xf32>,
    %c1_29 = arith.constant 1 : index
    %c0_30 = arith.constant 0 : index
    %61 = vector.load %arg2[%c1_29, %c0_30] : memref<8x128xf32, #tpu.memory_space<vmem>>, vector<1x128xf32>
    tpu.vector_store %arg2[%c1_29, %c0_30], %51 {strides = array<i32>} : memref<8x128xf32, #tpu.memory_space<vmem>>, vector<1x128xf32>,
    %62 = arith.subf %2, %8 : vector<1x128xf32>
    %63 = math.absf %62 : vector<1x128xf32>
    %cst_31 = arith.constant 1.000000e+00 : f32
    %64 = vector.broadcast %cst_31 : f32 to vector<1x128xf32>
    %65 = arith.cmpf olt, %63, %64 : vector<1x128xf32>
    %cst_32 = arith.constant 5.000000e-01 : f32
    %66 = vector.broadcast %cst_32 : f32 to vector<1x128xf32>
    %67 = arith.mulf %66, %63 : vector<1x128xf32>
    %68 = arith.mulf %67, %63 : vector<1x128xf32>
    %cst_33 = arith.constant 5.000000e-01 : f32
    %69 = vector.broadcast %cst_33 : f32 to vector<1x128xf32>
    %70 = arith.subf %63, %69 : vector<1x128xf32>
    %71 = arith.select %65, %68, %70 : vector<1x128xi1>, vector<1x128xf32>
    %72 = arith.mulf %55, %71 : vector<1x128xf32>
    %c2_34 = arith.constant 2 : index
    %c0_35 = arith.constant 0 : index
    %73 = vector.load %arg2[%c2_34, %c0_35] : memref<8x128xf32, #tpu.memory_space<vmem>>, vector<1x128xf32>
    tpu.vector_store %arg2[%c2_34, %c0_35], %72 {strides = array<i32>} : memref<8x128xf32, #tpu.memory_space<vmem>>, vector<1x128xf32>,
    %74 = arith.subf %3, %10 : vector<1x128xf32>
    %75 = math.absf %74 : vector<1x128xf32>
    %cst_36 = arith.constant 1.000000e+00 : f32
    %76 = vector.broadcast %cst_36 : f32 to vector<1x128xf32>
    %77 = arith.cmpf olt, %75, %76 : vector<1x128xf32>
    %cst_37 = arith.constant 5.000000e-01 : f32
    %78 = vector.broadcast %cst_37 : f32 to vector<1x128xf32>
    %79 = arith.mulf %78, %75 : vector<1x128xf32>
    %80 = arith.mulf %79, %75 : vector<1x128xf32>
    %cst_38 = arith.constant 5.000000e-01 : f32
    %81 = vector.broadcast %cst_38 : f32 to vector<1x128xf32>
    %82 = arith.subf %75, %81 : vector<1x128xf32>
    %83 = arith.select %77, %80, %82 : vector<1x128xi1>, vector<1x128xf32>
    %84 = arith.mulf %55, %83 : vector<1x128xf32>
    %c3_39 = arith.constant 3 : index
    %c0_40 = arith.constant 0 : index
    %85 = vector.load %arg2[%c3_39, %c0_40] : memref<8x128xf32, #tpu.memory_space<vmem>>, vector<1x128xf32>
    tpu.vector_store %arg2[%c3_39, %c0_40], %84 {strides = array<i32>} : memref<8x128xf32, #tpu.memory_space<vmem>>, vector<1x128xf32>,
    %c4_41 = arith.constant 4 : index
    %c0_42 = arith.constant 0 : index
    %86 = vector.load %arg2[%c4_41, %c0_42] : memref<8x128xf32, #tpu.memory_space<vmem>>, vector<1x128xf32>
    tpu.vector_store %arg2[%c4_41, %c0_42], %55 {strides = array<i32>} : memref<8x128xf32, #tpu.memory_space<vmem>>, vector<1x128xf32>,
    %87 = arith.subf %6, %9 : vector<1x128xf32>
    %88 = math.absf %87 : vector<1x128xf32>
    %cst_43 = arith.constant 1.000000e+00 : f32
    %89 = vector.broadcast %cst_43 : f32 to vector<1x128xf32>
    %90 = arith.cmpf olt, %88, %89 : vector<1x128xf32>
    %cst_44 = arith.constant 5.000000e-01 : f32
    %91 = vector.broadcast %cst_44 : f32 to vector<1x128xf32>
    %92 = arith.mulf %91, %88 : vector<1x128xf32>
    %93 = arith.mulf %92, %88 : vector<1x128xf32>
    %cst_45 = arith.constant 5.000000e-01 : f32
    %94 = vector.broadcast %cst_45 : f32 to vector<1x128xf32>
    %95 = arith.subf %88, %94 : vector<1x128xf32>
    %96 = arith.select %90, %93, %95 : vector<1x128xi1>, vector<1x128xf32>
    %97 = arith.mulf %59, %96 : vector<1x128xf32>
    %c5_46 = arith.constant 5 : index
    %c0_47 = arith.constant 0 : index
    %98 = vector.load %arg2[%c5_46, %c0_47] : memref<8x128xf32, #tpu.memory_space<vmem>>, vector<1x128xf32>
    tpu.vector_store %arg2[%c5_46, %c0_47], %97 {strides = array<i32>} : memref<8x128xf32, #tpu.memory_space<vmem>>, vector<1x128xf32>,
    %99 = arith.subf %7, %11 : vector<1x128xf32>
    %100 = math.absf %99 : vector<1x128xf32>
    %cst_48 = arith.constant 1.000000e+00 : f32
    %101 = vector.broadcast %cst_48 : f32 to vector<1x128xf32>
    %102 = arith.cmpf olt, %100, %101 : vector<1x128xf32>
    %cst_49 = arith.constant 5.000000e-01 : f32
    %103 = vector.broadcast %cst_49 : f32 to vector<1x128xf32>
    %104 = arith.mulf %103, %100 : vector<1x128xf32>
    %105 = arith.mulf %104, %100 : vector<1x128xf32>
    %cst_50 = arith.constant 5.000000e-01 : f32
    %106 = vector.broadcast %cst_50 : f32 to vector<1x128xf32>
    %107 = arith.subf %100, %106 : vector<1x128xf32>
    %108 = arith.select %102, %105, %107 : vector<1x128xi1>, vector<1x128xf32>
    %109 = arith.mulf %59, %108 : vector<1x128xf32>
    %c6_51 = arith.constant 6 : index
    %c0_52 = arith.constant 0 : index
    %110 = vector.load %arg2[%c6_51, %c0_52] : memref<8x128xf32, #tpu.memory_space<vmem>>, vector<1x128xf32>
    tpu.vector_store %arg2[%c6_51, %c0_52], %109 {strides = array<i32>} : memref<8x128xf32, #tpu.memory_space<vmem>>, vector<1x128xf32>,
    %c7_53 = arith.constant 7 : index
    %c0_54 = arith.constant 0 : index
    %111 = vector.load %arg2[%c7_53, %c0_54] : memref<8x128xf32, #tpu.memory_space<vmem>>, vector<1x128xf32>
    tpu.vector_store %arg2[%c7_53, %c0_54], %59 {strides = array<i32>} : memref<8x128xf32, #tpu.memory_space<vmem>>, vector<1x128xf32>,
    %c0_55 = arith.constant 0 : index
    %c0_56 = arith.constant 0 : index
    %112 = vector.load %arg2[%c0_55, %c0_56] : memref<8x128xf32, #tpu.memory_space<vmem>>, vector<8x128xf32>
    %cst_57 = arith.constant dense<0.000000e+00> : vector<8xf32>
    %113 = vector.multi_reduction <add>, %112, %cst_57 [1] : vector<8x128xf32> to vector<8xf32>
    %114 = vector.shape_cast %113 : vector<8xf32> to vector<8x1xf32>
    %c0_58 = arith.constant 0 : index
    %c0_59 = arith.constant 0 : index
    %115 = vector.load %arg1[%c0_58, %c0_59] : memref<8x1xf32, #tpu.memory_space<vmem>>, vector<8x1xf32>
    tpu.vector_store %arg1[%c0_58, %c0_59], %114 {strides = array<i32>} : memref<8x1xf32, #tpu.memory_space<vmem>>, vector<8x1xf32>,
    return
  }
}

</mosaic_0001>

<bundles_post_ra>
// kernel: binrot_loss_pallas.1
= control target key start
LH: loop header
LB: loop body
LE: loop exit
PB: predicated region body
PF: predicated region fallthrough
CT: control target
= control target key end

     0   :  { %v124_v26 = vmov 0.0   ;;  %vm103_vm6 = vcmask 7168   ;;  %s186_s0 = inlined_call_operand.vmem [shape: f32[16,128], index: 0, kind: input, shape index: {}]   ;;  %s187_s1 = inlined_call_operand.vmem [shape: f32[8,1], index: 1, kind: output, shape index: {}]  }
   0x1   :  { %v8_v0 = vld [vmem:[%s186_s0] sm:$0x1]  ;;  %v9_v1 = vld [vmem:[%s186_s0 + $0x1] sm:$0x1]  ;;  %v10_v2 = vld [vmem:[%s186_s0 + $0x2] sm:$0x1] }
   0x2   :  { %v11_v3 = vld [vmem:[%s186_s0 + $0x3] sm:$0x1]  ;;  %v12_v4 = vld [vmem:[%s186_s0 + $0x4] sm:$0x1]  ;;  %v13_v5 = vld [vmem:[%s186_s0 + $0x5] sm:$0x1]  ;;  %v26_v6 = vsub.f32 %v9_v1, %v8_v0 }
   0x3   :  { %v14_v7 = vld [vmem:[%s186_s0 + $0x6] sm:$0x1]  ;;  %v16_v8 = vld [vmem:[%s186_s0 + $0x8] sm:$0x1]  ;;  %v41_v9 = vsub.f32 %v13_v5, %v12_v4  ;;  %v15_v10 = vld [vmem:[%s186_s0 + $0x7] sm:$0x1] }
   0x4   :  { %v17_v11 = vld [vmem:[%s186_s0 + $0x9] sm:$0x1]  ;;  %v18_v12 = vld [vmem:[%s186_s0 + $0xa] sm:$0x1]  ;;  %v62_v13 = vsub.f32 %v10_v2, %v16_v8  ;;  %v19_v14 = vld [vmem:[%s186_s0 + $0xb] sm:$0x1] }
   0x5   :  { %v20_v15 = vld [vmem:[%s186_s0 + $0xc] sm:$0x1]  ;;  %v22_v16 = vld [vmem:[%s186_s0 + $0xe] sm:$0x1]  ;;  %v71_v17 = vsub.f32 %v11_v3, %v18_v12  ;;  %v81_v18 = vsub.f32 %v14_v7, %v17_v11  ;;  %v23_v19 = vld [vmem:[%s186_s0 + $0xf] sm:$0x1]  ;;  %v90_v29 = vsub.f32 %v15_v10, %v19_v14 }
   0x6   :  { %v24_v20 = vmul.f32 2.0, %v22_v16  ;;  %v27_v21 = vmul.f32 %v26_v6, %v20_v15  ;;  %v42_v22 = vmul.f32 %v41_v9, %v20_v15  ;;  %vm54_vm0 = vcmp.ne.f32.partialorder %v22_v16, 0.0  ;;  %v21_v7 = vld [vmem:[%s186_s0 + $0xd] sm:$0x1] }
   0x7   :  { %v39_v23 = vmul.f32 2.0, %v23_v19  ;;  %vm57_vm1 = vcmp.ne.f32.partialorder %v23_v19, 0.0  ;;  %v63_v24 = vand.u32 2147483647, %v62_v13  ;;  %v109_v27 = vsel %vm54_vm0, 1.0, %v124_v26 }
   0x8   :  { %v25_v25 = vsub.f32 1.0, %v24_v20  ;;  %v72_v28 = vand.u32 2147483647, %v71_v17  ;;  %v110_v31 = vsel %vm57_vm1, 1.0, %v124_v26  ;;  %80 = vst [vmem:[#allocation2 + $0x4] sm:$0x1] %v109_v27 }
   0x9   :  { %v40_v30 = vsub.f32 1.0, %v39_v23  ;;  %v65_v32 = vmul.f32 0.5, %v63_v24  ;;  %v111_v33 = vadd.f32 -0.5, %v63_v24  ;;  %vm64_vm2 = vcmp.lt.f32.partialorder %v63_v24, 1.0  ;;  %99 = vst [vmem:[#allocation2 + $0x7] sm:$0x1] %v110_v31 }
   0xa   :  { %v28_v34 = vmul.f32 %v27_v21, %v25_v25  ;;  %v74_v35 = vmul.f32 0.5, %v72_v28  ;;  %v112_v36 = vadd.f32 -0.5, %v72_v28  ;;  %vm73_vm3 = vcmp.lt.f32.partialorder %v72_v28, 1.0 }
   0xb   :  { %v43_v37 = vmul.f32 %v42_v22, %v40_v30  ;;  %v66_v38 = vmul.f32 %v65_v32, %v63_v24  ;;  %v82_v39 = vand.u32 2147483647, %v81_v18  ;;  %v91_v42 = vand.u32 2147483647, %v90_v29 }
   0xc   :  { %v30_v40 = vand.u32 2147483647, %v28_v34  ;;  %v75_v41 = vmul.f32 %v74_v35, %v72_v28  ;;  %v29_v2 = vmax.f32 %v28_v34, 0.0 }
   0xd   :  { %v45_v43 = vand.u32 2147483647, %v43_v37  ;;  %v68_v44 = vsel %vm64_vm2, %v66_v38, %v111_v33  ;;  %v84_v48 = vmul.f32 0.5, %v82_v39  ;;  %vm83_vm4 = vcmp.lt.f32.partialorder %v82_v39, 1.0 }
   0xe   :  { %v31_v45 = vsub.f32 0.0, %v30_v40  ;;  %v69_v46 = vmul.f32 %v109_v27, %v68_v44  ;;  %v77_v47 = vsel %vm73_vm3, %v75_v41, %v112_v36  ;;  %v113_v51 = vadd.f32 -0.5, %v82_v39 }
   0xf   :  { %v46_v49 = vsub.f32 0.0, %v45_v43  ;;  %v78_v50 = vmul.f32 %v109_v27, %v77_v47  ;;  %v85_v53 = vmul.f32 %v84_v48, %v82_v39  ;;  %v93_v54 = vmul.f32 0.5, %v91_v42 }
  0x10   :  { %v32_v52 = vmul.f32 1.442695, %v31_v45  ;;  %70 = vst [vmem:[#allocation2 + $0x2] sm:$0x1] %v69_v46  ;;  %v114_v55 = vadd.f32 -0.5, %v91_v42  ;;  %vm92_vm5 = vcmp.lt.f32.partialorder %v91_v42, 1.0 }
  0x11   :  { %v47_v56 = vmul.f32 1.442695, %v46_v49  ;;  %79 = vst [vmem:[#allocation2 + $0x3] sm:$0x1] %v78_v50  ;;  %v87_v57 = vsel %vm83_vm4, %v85_v53, %v113_v51  ;;  %v94_v58 = vmul.f32 %v93_v54, %v91_v42  ;;  %v44_v4 = vmax.f32 %v43_v37, 0.0 }
  0x12   :  { %116 = vpow2.f32 %v32_v52  ;;  %v88_v59 = vmul.f32 %v110_v31, %v87_v57 }
  0x13   :  { %118 = vpow2.f32 %v47_v56  ;;  %v96_v60 = vsel %vm92_vm5, %v94_v58, %v114_v55 }
  0x14   :  { %89 = vst [vmem:[#allocation2 + $0x5] sm:$0x1] %v88_v59  ;;  %v97_v61 = vmul.f32 %v110_v31, %v96_v60 }
  0x16   :  { %98 = vst [vmem:[#allocation2 + $0x6] sm:$0x1] %v97_v61 }
  0x18   :  { %v117_v62 = vpop.eup %116 }
  0x19   :  { %v119_v63 = vpop.eup %118  ;;  %v34_v0 = vadd.f32 1.0, %v117_v62 }
  0x1a   :  { %v49_v1 = vadd.f32 1.0, %v119_v63 }
  0x1b   :  { %120 = vlog2.f32 %v34_v0 }
  0x1c   :  { %122 = vlog2.f32 %v49_v1 }
  0x21   :  { %v121_v3 = vpop.eup %120 }
  0x22   :  { %v123_v5 = vpop.eup %122  ;;  %v36_v6 = vmul.f32 0.6931472, %v121_v3 }
  0x23   :  { %v51_v8 = vmul.f32 0.6931472, %v123_v5 }
  0x24   :  { %v37_v9 = vadd.f32 %v36_v6, %v29_v2 }
  0x25   :  { %v52_v10 = vadd.f32 %v51_v8, %v44_v4 }
  0x26   :  { %v38_v11 = vmul.f32 %v37_v9, %v21_v7 }
  0x27   :  { %v53_v12 = vmul.f32 %v52_v10, %v21_v7 }
  0x28   :  { %60 = vst [vmem:[#allocation2] sm:$0x1] %v38_v11 }
  0x29   :  { %61 = vst [vmem:[#allocation2 + $0x1] sm:$0x1] %v53_v12 }
  0x30   :  { %v100_v13 = vld [vmem:[#allocation2] sm:$0xff] }
  0x31   :  { %101 = vadd.xlane.f32.xlu0 %v100_v13 }
  0xa4   :  { %v102_v14 = vpop.xlane.xlu0 %101 }
  0xa5   :  { %104 = vst.msk [vmem:[%s187_s1] sm:$0xff] %vm103_vm6, %v102_v14 }

</bundles_post_ra>
